<compile_context>
chip_gen: v7x
topology: tpu7x:2x2x1
jax: 0.10.0
libtpu: 0.0.40
codegen_flags: <defaults>
</compile_context>

<pallas_src>
import jax
import jax.numpy as jnp
from jax.experimental import pallas as pl
from jax.experimental.pallas import tpu as pltpu

LANES = 128     # vreg lane count (last dim)
SUBLANES = 8    # vreg sublane count (second-last dim, f32)


def _policy_probs_kernel(w_ref, b_ref, x_ref, p_fwd_ref, p_bwd_ref):
    """Fused Linear(1,1) + sigmoid + [p, 1-p] over a lane-dense batch tile.

    w_ref, b_ref : (1,) scalars in SMEM (linear_net.weight / linear_net.bias)
    x_ref        : (tm, 128) observations (batch folded onto sublanes x lanes)
    p_fwd_ref    : (tm, 128) P(action = forward)
    p_bwd_ref    : (tm, 128) P(action = backward) = 1 - p_fwd
    """
    w = w_ref[0]
    b = b_ref[0]

    # nn.Linear(1, 1) on a one-dimensional state: y = x * w + b
    z = x_ref[...] * w + b

    # Sigmoid -> exp + reciprocal route to the EUP slot (VALU stays free).
    p_fwd = jax.nn.sigmoid(z)

    p_fwd_ref[...] = p_fwd
    p_bwd_ref[...] = 1.0 - p_fwd


def policy_network_probs(observ, weight, bias, *, tm=512):
    """Categorical `probs` table of shape (B, 2); col 0 = forward, col 1 = backward.

    observ : (B, 1) or (B,) float32 one-dimensional state observations
    weight : (1, 1) float32   (linear_net.weight)
    bias   : (1,)   float32   (linear_net.bias)
    tm     : rows-per-block of the reshaped (rows, 128) layout
    """
    observ = observ.astype(jnp.float32).reshape(-1)          # (B,)
    B = observ.shape[0]
    w_flat = weight.reshape(1).astype(jnp.float32)
    b_flat = bias.reshape(1).astype(jnp.float32)

    # Fold batch onto a lane-dense (rows, 128) slab; rows is a multiple of the
    # sublane count (8) and of the tile height tm so every block is full.
    rows = pl.cdiv(B, LANES)
    rows = pl.cdiv(rows, SUBLANES) * SUBLANES
    tm = max(SUBLANES, min(tm, rows))
    rows = pl.cdiv(rows, tm) * tm
    padded_B = rows * LANES

    x2d = jnp.pad(observ, (0, padded_B - B)).reshape(rows, LANES)

    grid = (rows // tm,)
    p_fwd, p_bwd = pl.pallas_call(
        _policy_probs_kernel,
        out_shape=(
            jax.ShapeDtypeStruct((rows, LANES), jnp.float32),
            jax.ShapeDtypeStruct((rows, LANES), jnp.float32),
        ),
        grid=grid,
        in_specs=[
            pl.BlockSpec(memory_space=pltpu.MemorySpace.SMEM),   # weight scalar
            pl.BlockSpec(memory_space=pltpu.MemorySpace.SMEM),   # bias scalar
            pl.BlockSpec((tm, LANES), lambda i: (i, 0)),         # observ tile
        ],
        out_specs=(
            pl.BlockSpec((tm, LANES), lambda i: (i, 0)),         # p_forward tile
            pl.BlockSpec((tm, LANES), lambda i: (i, 0)),         # p_backward tile
        ),
        compiler_params=pltpu.CompilerParams(
            dimension_semantics=("parallel",),   # v7x: shard batch over 2 TCs
        ),
    )(w_flat, b_flat, x2d)

    # Layout plumbing back to the PyTorch (B, 2) action-last probability table.
    probs = jnp.stack([p_fwd.reshape(padded_B), p_bwd.reshape(padded_B)], axis=-1)
    return probs[:B]


def _reference_probs(observ, weight, bias):
    z = observ.astype(jnp.float32) @ weight.T.astype(jnp.float32) + bias
    p_fwd = jax.nn.sigmoid(z)
    return jnp.concatenate([p_fwd, 1.0 - p_fwd], axis=-1)


if __name__ == "__main__":
    # nA_list: all states must share the same nA (two actions).
    nA_list = [2, 2, 2, 2, 2]
    assert nA_list.count(nA_list[0]) == len(nA_list)

    key = jax.random.PRNGKey(0)
    k_w, k_b, k_x, k_x2 = jax.random.split(key, 4)

    # Deterministic parameter init (shapes from nn.Linear(1, 1)).
    weight = jax.random.uniform(k_w, (1, 1), jnp.float32, -1.0, 1.0)
    bias = jax.random.uniform(k_b, (1,), jnp.float32, -1.0, 1.0)

    # Small batch of one-dimensional state observations: (B, 1).
    # (At this size plain XLA would beat any Pallas launch; the kernel is
    #  written for the large-batch regime and merely demonstrated here.)
    B = 300
    observ = jax.random.normal(k_x, (B, 1), jnp.float32)

    probs = jax.block_until_ready(policy_network_probs(observ, weight, bias))
    ref = _reference_probs(observ, weight, bias)
    assert probs.shape == (B, 2)
    assert jnp.allclose(probs, ref, atol=1e-6), (probs, ref)
    assert jnp.allclose(probs.sum(axis=-1), 1.0, atol=1e-6)

    # Also exercise the multi-block (grid > 1) padded path with a small tile.
    B2 = 2500
    observ2 = jax.random.normal(k_x2, (B2, 1), jnp.float32)
    probs2 = jax.block_until_ready(
        policy_network_probs(observ2, weight, bias, tm=8))
    ref2 = _reference_probs(observ2, weight, bias)
    assert probs2.shape == (B2, 2)
    assert jnp.allclose(probs2, ref2, atol=1e-6)
    assert jnp.allclose(probs2.sum(axis=-1), 1.0, atol=1e-6)

    # TODO(synk): torch.distributions.Categorical itself (sampling / log_prob)
    # is distribution-object machinery, not a tensor op; kernel returns `probs`.
    print("KERNEL_OK")
</pallas_src>

<mosaic_0001>
module attributes {stable_mosaic.version = 11 : i64} {
  func.func @_policy_probs_kernel(%arg0: i32, %arg1: memref<1xf32, #tpu.memory_space<smem>>, %arg2: memref<1xf32, #tpu.memory_space<smem>>, %arg3: memref<8x128xf32, #tpu.memory_space<vmem>>, %arg4: memref<8x128xf32, #tpu.memory_space<vmem>>, %arg5: memref<8x128xf32, #tpu.memory_space<vmem>>) attributes {dimension_semantics = [#tpu.dimension_semantics<parallel>], iteration_bounds = array<i64: 1>, scalar_prefetch = 0 : i64, scratch_operands = 0 : i64, tpu.core_type = #tpu.core_type<tc>, window_params = [{transform_indices = @transform_0, window_bounds = array<i64: 1>}, {transform_indices = @transform_1, window_bounds = array<i64: 1>}, {transform_indices = @transform_2, window_bounds = array<i64: 8, 128>}, {transform_indices = @transform_3, window_bounds = array<i64: 8, 128>}, {transform_indices = @transform_4, window_bounds = array<i64: 8, 128>}]} {
    %c0 = arith.constant 0 : index
    %0 = memref.load %arg1[%c0] : memref<1xf32, #tpu.memory_space<smem>>
    %c0_0 = arith.constant 0 : index
    %1 = memref.load %arg2[%c0_0] : memref<1xf32, #tpu.memory_space<smem>>
    %c0_1 = arith.constant 0 : index
    %c0_2 = arith.constant 0 : index
    %2 = vector.load %arg3[%c0_1, %c0_2] : memref<8x128xf32, #tpu.memory_space<vmem>>, vector<8x128xf32>
    %3 = vector.broadcast %0 : f32 to vector<8x128xf32>
    %4 = arith.mulf %2, %3 : vector<8x128xf32>
    %5 = vector.broadcast %1 : f32 to vector<8x128xf32>
    %6 = arith.addf %4, %5 : vector<8x128xf32>
    %7 = arith.negf %6 : vector<8x128xf32>
    %8 = math.exp %7 : vector<8x128xf32>
    %cst = arith.constant 1.000000e+00 : f32
    %9 = vector.broadcast %cst : f32 to vector<8x128xf32>
    %10 = arith.addf %9, %8 : vector<8x128xf32>
    %11 = arith.divf %9, %10 : vector<8x128xf32>
    %c0_3 = arith.constant 0 : index
    %c0_4 = arith.constant 0 : index
    %12 = vector.load %arg4[%c0_3, %c0_4] : memref<8x128xf32, #tpu.memory_space<vmem>>, vector<8x128xf32>
    tpu.vector_store %arg4[%c0_3, %c0_4], %11 {strides = array<i32>} : memref<8x128xf32, #tpu.memory_space<vmem>>, vector<8x128xf32>,
    %cst_5 = arith.constant 1.000000e+00 : f32
    %13 = vector.broadcast %cst_5 : f32 to vector<8x128xf32>
    %14 = arith.subf %13, %11 : vector<8x128xf32>
    %c0_6 = arith.constant 0 : index
    %c0_7 = arith.constant 0 : index
    %15 = vector.load %arg5[%c0_6, %c0_7] : memref<8x128xf32, #tpu.memory_space<vmem>>, vector<8x128xf32>
    tpu.vector_store %arg5[%c0_6, %c0_7], %14 {strides = array<i32>} : memref<8x128xf32, #tpu.memory_space<vmem>>, vector<8x128xf32>,
    return
  }
  func.func @transform_0(%arg0: i32) -> i32 {
    %c0_i32 = arith.constant 0 : i32
    %c0_i32_0 = arith.constant 0 : i32
    return %c0_i32 : i32
  }
  func.func @transform_1(%arg0: i32) -> i32 {
    %c0_i32 = arith.constant 0 : i32
    %c0_i32_0 = arith.constant 0 : i32
    return %c0_i32 : i32
  }
  func.func @transform_2(%arg0: i32) -> (i32, i32) {
    %c0_i32 = arith.constant 0 : i32
    %c0_i32_0 = arith.constant 0 : i32
    return %arg0, %c0_i32 : i32, i32
  }
  func.func @transform_3(%arg0: i32) -> (i32, i32) {
    %c0_i32 = arith.constant 0 : i32
    %c0_i32_0 = arith.constant 0 : i32
    return %arg0, %c0_i32 : i32, i32
  }
  func.func @transform_4(%arg0: i32) -> (i32, i32) {
    %c0_i32 = arith.constant 0 : i32
    %c0_i32_0 = arith.constant 0 : i32
    return %arg0, %c0_i32 : i32, i32
  }
}

</mosaic_0001>

<bundles_post_ra>
// kernel: tpu_custom_call.1
= control target key start
LH: loop header
LB: loop body
LE: loop exit
PB: predicated region body
PF: predicated region fallthrough
CT: control target
= control target key end

     0   :  { %12 = vsyncpa [#allocation5], 0  ;;  %s227_s0 = inlined_call_operand.<no memory space> [shape: f32[1], index: 0, kind: input, shape index: {}]   ;;  %s228_s1 = inlined_call_operand.<no memory space> [shape: f32[1], index: 1, kind: input, shape index: {}]   ;;  %s229_s2 = inlined_call_operand.hbm [shape: f32[8,128], index: 2, kind: input, shape index: {}]   ;;  %s230_s3 = inlined_call_operand.hbm [shape: f32[8,128], index: 3, kind: output, shape index: {0}]   ;;  %s231_s4 = inlined_call_operand.hbm [shape: f32[8,128], index: 4, kind: output, shape index: {1}]  }
   0x1   :  { %13 = vsyncpa [#allocation6], 0 }
   0x2   :  { %14 = vsyncpa [#allocation9], 0  ;;  %s157_s15 = smov [#allocation4]   ;;  %s85_s19 = scalar_lea.hbm %s229_s2, 128 }
   0x3   :  { %s25_s16 = sshll.u32 %s157_s15, 4  ;;  %p86_p0 = scmp.ne.s32.totalorder %s229_s2, %s85_s19  ;;  %s26_s16 = int_to_ptr.vmem [resolvable:$true] %s25_s16 }
   0x4   :  { %p89_p1 = scmp.lt.u32.totalorder %s85_s19, %s229_s2 }
   0x6   :  { %p91_p2 = pnand %p89_p1, %p86_p0 }
   0x8   :  { %94 = shalt.err (!%p91_p2)
}
   0x9   :  { %s95_s24 = scalar_lea.vmem %s26_s16, 128  ;;  %p100_p4 = scmp.lt.s32.totalorder %s26_s16, %s26_s16 }
   0xa   :  { %p96_p3 = scmp.ne.s32.totalorder %s26_s16, %s95_s24  ;;  %p101_p5 = scmp.lt.s32.totalorder %s95_s24, %s95_s24 }
   0xc   :  { %p102_p6 = por %p101_p5, %p100_p4 }
   0xe   :  { %p103_p7 = pnand %p102_p6, %p96_p3 }
  0x10   :  { %106 = shalt.err (!%p103_p7)
}
  0x11   :  { %28 = dma.hbm_to_vmem [thread:$0]  %s229_s2, 128, %s26_s16, [#allocation5]  }
  0x12   :  { %151 = dma.done.wait [#allocation5], 128  }
  0x13   :  { %152 = vsyncadd [#allocation5], 4294967168  ;;  %v35_v0 = vstv %s227_s0  ;;  %v34_v1 = vld [vmem:[#allocation4] sm:$0xff]  ;;  %v37_v2 = vstv %s228_s1  ;;  %s158_s5 = smov [#allocation7]   ;;  %s159_s6 = smov [#allocation8]  }
  0x14   :  { %v36_v3 = vmul.f32 %v35_v0, %v34_v1  ;;  %s54_s2 = sshll.u32 %s158_s5, 4  ;;  %s64_s7 = sshll.u32 %s159_s6, 4  ;;  %s55_s2 = int_to_ptr.vmem [resolvable:$true] %s54_s2  ;;  %s65_s7 = int_to_ptr.vmem [resolvable:$true] %s64_s7 }
  0x15   :  { %s107_s0 = scalar_lea.vmem %s55_s2, 128  ;;  %p112_p9 = scmp.lt.s32.totalorder %s55_s2, %s55_s2 }
  0x16   :  { %v38_v4 = vadd.f32 %v37_v2, %v36_v3  ;;  %p108_p8 = scmp.ne.s32.totalorder %s55_s2, %s107_s0  ;;  %p113_p10 = scmp.lt.s32.totalorder %s107_s0, %s107_s0 }
  0x18   :  { %v77_v5 = vmul.f32 -1.442695, %v38_v4  ;;  %p114_p11 = por %p113_p10, %p112_p9 }
  0x1a   :  { %81 = vpow2.f32 %v77_v5  ;;  %p115_p12 = pnand %p114_p11, %p108_p8 }
  0x24   :  { %v82_v6 = vpop.eup %81 }
  0x25   :  { %v42_v7 = vadd.f32 1.0, %v82_v6 }
  0x27   :  { %83 = vrcp.f32 %v42_v7 }
  0x31   :  { %v84_v8 = vpop.eup %83 }
  0x32   :  { %45 = vst [vmem:[#allocation7] sm:$0xff] %v84_v8  ;;  %v46_v9 = vsub.f32 1.0, %v84_v8 }
  0x33   :  { %118 = shalt.err (!%p115_p12)
}
  0x34   :  { %s119_s9 = scalar_lea.hbm %s230_s3, 128 }
  0x35   :  { %p120_p13 = scmp.ne.s32.totalorder %s230_s3, %s119_s9  ;;  %p123_p0 = scmp.lt.u32.totalorder %s119_s9, %s230_s3 }
  0x37   :  { %p125_p1 = pnand %p123_p0, %p120_p13 }
  0x39   :  { %128 = shalt.err (!%p125_p1)
}
  0x3a   :  { %57 = dma.vmem_to_hbm [thread:$0]  %s55_s2, 128, %s230_s3, [#allocation6]   ;;  %47 = vst [vmem:[#allocation8] sm:$0xff] %v46_v9 }
  0x3b   :  { %s129_s16 = scalar_lea.vmem %s65_s7, 128  ;;  %p134_p3 = scmp.lt.s32.totalorder %s65_s7, %s65_s7 }
  0x3c   :  { %p130_p2 = scmp.ne.s32.totalorder %s65_s7, %s129_s16  ;;  %p135_p4 = scmp.lt.s32.totalorder %s129_s16, %s129_s16 }
  0x3e   :  { %p136_p5 = por %p135_p4, %p134_p3 }
  0x40   :  { %p137_p6 = pnand %p136_p5, %p130_p2 }
  0x42   :  { %140 = shalt.err (!%p137_p6)
}
  0x43   :  { %s141_s19 = scalar_lea.hbm %s231_s4, 128 }
  0x44   :  { %p142_p7 = scmp.ne.s32.totalorder %s231_s4, %s141_s19  ;;  %p145_p8 = scmp.lt.u32.totalorder %s141_s19, %s231_s4 }
  0x46   :  { %p147_p9 = pnand %p145_p8, %p142_p7 }
  0x48   :  { %150 = shalt.err (!%p147_p9)
}
  0x49   :  { %67 = dma.vmem_to_hbm [thread:$0]  %s65_s7, 128, %s231_s4, [#allocation9]  }
  0x4a   :  { %153 = dma.done.wait [#allocation6], 128  }
  0x4b   :  { %154 = vsyncadd [#allocation6], 4294967168 }
  0x4c   :  { %155 = dma.done.wait [#allocation9], 128  }
  0x4d   :  { %156 = vsyncadd [#allocation9], 4294967168 }
  0x4e   :  { %74 = vsyncpa [#allocation5], 1 }
  0x4f   :  { %75 = vsyncpa [#allocation6], 1 }
  0x50   :  { %76 = vsyncpa [#allocation9], 1 }

</bundles_post_ra>
